<compile_context>
chip_gen: v7x
topology: tpu7x:2x2x1
jax: 0.10.0
libtpu: 0.0.40
codegen_flags: <defaults>
</compile_context>

<pallas_src>
import functools

import jax
import jax.numpy as jnp
from jax.experimental import pallas as pl
from jax.experimental.pallas import tpu as pltpu


def _gelu_tanh(x):
    # Megatron-style tanh-approximate GELU.
    return 0.5 * x * (1.0 + jnp.tanh(0.7978845608028654 * (x + 0.044715 * x * x * x)))


def _round_up(x, m):
    return ((x + m - 1) // m) * m


def _vmem_budget_bytes():
    """Generation-aware VMEM budget: ~80% of physical, capped at 100 MiB.

    v5e/v6e have 128 MiB per core -> ~100 MiB budget; v7x has 64 MiB -> ~51 MiB,
    leaving headroom for Mosaic internal scratch / spills."""
    cap = None
    try:
        cap = getattr(pltpu.get_tpu_info(), "vmem_capacity_bytes", None)
    except Exception:
        cap = None
    if not cap:
        cap = 128 * 1024 * 1024
    return min(int(cap * 0.8), 100 * 1024 * 1024)


def vit_mlp_kernel(x_ref, w1_ref, b1_ref, w2_ref, b2_ref, o_ref, *, eps):
    # LayerNorm in f32 (gamma/beta already folded into W1'/b1' in the wrapper).
    x = x_ref[...].astype(jnp.float32)
    mean = jnp.mean(x, axis=-1, keepdims=True)
    xc = x - mean
    var = jnp.mean(xc * xc, axis=-1, keepdims=True)
    xhat = (xc * jax.lax.rsqrt(var + eps)).astype(w1_ref.dtype)

    # dense_h_to_4h (+ folded bias) -> GELU        (bf16 MXU inputs, f32 accum)
    h1 = jnp.dot(xhat, w1_ref[...], preferred_element_type=jnp.float32)
    h1 = _gelu_tanh(h1 + b1_ref[...])

    # dense_4h_to_h + output bias, dropout (identity, inference), + residual.
    out = jnp.dot(h1.astype(w2_ref.dtype), w2_ref[...],
                  preferred_element_type=jnp.float32)
    o_ref[...] = (out + b2_ref[...] + x).astype(o_ref.dtype)


def vit_mlp_tp(hidden_states, params, *, eps=1e-12, tm=512):
    """hidden_states: (batch, seq, hidden)."""
    B, S, H = hidden_states.shape
    F = params["w1"].shape[1]
    T = B * S
    io_dtype = hidden_states.dtype
    io_bytes = jnp.dtype(io_dtype).itemsize

    gamma = params["gamma"].astype(jnp.float32)
    beta = params["beta"].astype(jnp.float32)
    w1 = params["w1"].astype(jnp.float32)
    b1 = params["b1"].astype(jnp.float32)

    # Fold the LayerNorm affine into the first dense layer (done once, in XLA):
    #   (xhat*gamma + beta) @ W1 + b1 == xhat @ (gamma[:,None]*W1) + (beta@W1 + b1)
    w1p = (gamma[:, None] * w1).astype(jnp.bfloat16)
    b1p = (beta @ w1 + b1).reshape(1, F).astype(jnp.float32)
    w2p = params["w2"].astype(jnp.bfloat16)
    b2p = params["b2"].reshape(1, H).astype(jnp.float32)

    vmem_budget = _vmem_budget_bytes()
    # Resident, single-buffered weights + biases (bf16 mats, f32 biases).
    weight_bytes = 2 * (H * F) * 2 + (F + H) * 4
    # TODO(synk): if weight_bytes alone exceeds the budget (not the case for
    # ViT-sized layers), fall back to an F-tiled streamed-weights variant.

    def tile_bytes(t):
        # double-buffered x/out tiles + f32 LN temps + f32 h1 + bf16 h1 copy
        return t * (H * (4 * io_bytes + 4 + 2) + F * (4 + 2))

    # Token tile: multiple of 8, no larger than the (padded) token count,
    # shrunk until resident weights + per-tile activations fit the budget.
    tm = max(8, min((tm // 8) * 8, _round_up(T, 8)))
    while tm > 8 and weight_bytes + tile_bytes(tm) > int(0.85 * vmem_budget):
        tm = max(8, ((tm // 2) // 8) * 8)

    Tp = _round_up(T, tm)
    x2d = hidden_states.reshape(T, H)
    if Tp != T:
        # Zero rows are LayerNorm-safe (xc == 0 -> xhat == 0); sliced off below.
        x2d = jnp.pad(x2d, ((0, Tp - T), (0, 0)))

    grid = (Tp // tm,)

    cost = pl.CostEstimate(
        flops=4 * Tp * H * F,                          # two matmuls, 2 flops/MAC
        transcendentals=Tp * F,                        # tanh in GELU
        bytes_accessed=(2 * Tp * H * io_bytes          # activations in + out
                        + 2 * H * F * 2 + (F + H) * 4),  # weights fetched once
    )

    kernel = functools.partial(vit_mlp_kernel, eps=eps)

    out = pl.pallas_call(
        kernel,
        out_shape=jax.ShapeDtypeStruct((Tp, H), io_dtype),
        grid=grid,
        in_specs=[
            pl.BlockSpec((tm, H), lambda i: (i, 0)),                  # x tile
            pl.BlockSpec(memory_space=pltpu.MemorySpace.VMEM),        # W1' resident
            pl.BlockSpec(memory_space=pltpu.MemorySpace.VMEM),        # b1' resident
            pl.BlockSpec(memory_space=pltpu.MemorySpace.VMEM),        # W2 resident
            pl.BlockSpec(memory_space=pltpu.MemorySpace.VMEM),        # b2 resident
        ],
        out_specs=pl.BlockSpec((tm, H), lambda i: (i, 0)),
        compiler_params=pltpu.CompilerParams(
            dimension_semantics=("parallel",),
            vmem_limit_bytes=vmem_budget,
        ),
        cost_estimate=cost,
    )(x2d, w1p, b1p, w2p, b2p)

    return out[:T].reshape(B, S, H)


def make_params(key, hidden, ffn):
    k1, k2, k3, k4 = jax.random.split(key, 4)
    return {
        "gamma": jnp.ones((hidden,), jnp.float32),
        "beta": jnp.zeros((hidden,), jnp.float32),
        "w1": (jax.random.normal(k1, (hidden, ffn), jnp.float32) * 0.02),
        "b1": (jax.random.normal(k2, (ffn,), jnp.float32) * 0.02),
        "w2": (jax.random.normal(k3, (ffn, hidden), jnp.float32) * 0.02),
        "b2": (jax.random.normal(k4, (hidden,), jnp.float32) * 0.02),
    }


def reference(hidden_states, params, eps=1e-12):
    x = hidden_states
    mean = jnp.mean(x, -1, keepdims=True)
    var = jnp.mean((x - mean) ** 2, -1, keepdims=True)
    h = (x - mean) * jax.lax.rsqrt(var + eps) * params["gamma"] + params["beta"]
    h1 = _gelu_tanh(h @ params["w1"] + params["b1"])
    h2 = h1 @ params["w2"] + params["b2"]
    return h2 + x


if __name__ == "__main__":
    key = jax.random.PRNGKey(0)
    kx, kp = jax.random.split(key)

    batch, seq, hidden = 2, 8, 32
    ffn = 4 * hidden  # 128

    x = jax.random.normal(kx, (batch, seq, hidden), jnp.float32)
    params = make_params(kp, hidden, ffn)

    out = vit_mlp_tp(x, params)
    out = jax.block_until_ready(out)

    ref = reference(x, params)
    assert out.shape == (batch, seq, hidden)
    # bf16 MXU inputs (f32 accumulation) -> looser tolerance vs pure-f32 reference.
    assert jnp.allclose(out, ref, atol=1e-2, rtol=1e-2), "mismatch vs reference"

    print("KERNEL_OK")
</pallas_src>

<mosaic_0001>
module attributes {stable_mosaic.version = 11 : i64} {
  func.func @vit_mlp_kernel(%arg0: i32, %arg1: memref<16x32xf32, #tpu.memory_space<vmem>>, %arg2: memref<32x128xbf16, #tpu.memory_space<vmem>>, %arg3: memref<1x128xf32, #tpu.memory_space<vmem>>, %arg4: memref<128x32xbf16, #tpu.memory_space<vmem>>, %arg5: memref<1x32xf32, #tpu.memory_space<vmem>>, %arg6: memref<16x32xf32, #tpu.memory_space<vmem>>) attributes {dimension_semantics = [#tpu.dimension_semantics<parallel>], iteration_bounds = array<i64: 1>, scalar_prefetch = 0 : i64, scratch_operands = 0 : i64, tpu.core_type = #tpu.core_type<tc>, window_params = [{transform_indices = @transform_0, window_bounds = array<i64: 16, 32>}, {pipeline_mode = #tpu.pipeline_mode<synchronous>, transform_indices = @transform_1, window_bounds = array<i64: 32, 128>}, {pipeline_mode = #tpu.pipeline_mode<synchronous>, transform_indices = @transform_2, window_bounds = array<i64: 1, 128>}, {pipeline_mode = #tpu.pipeline_mode<synchronous>, transform_indices = @transform_3, window_bounds = array<i64: 128, 32>}, {pipeline_mode = #tpu.pipeline_mode<synchronous>, transform_indices = @transform_4, window_bounds = array<i64: 1, 32>}, {transform_indices = @transform_5, window_bounds = array<i64: 16, 32>}]} {
    %c0 = arith.constant 0 : index
    %c0_0 = arith.constant 0 : index
    %0 = vector.load %arg1[%c0, %c0_0] : memref<16x32xf32, #tpu.memory_space<vmem>>, vector<16x32xf32>
    %cst = arith.constant dense<0.000000e+00> : vector<16xf32>
    %1 = vector.multi_reduction <add>, %0, %cst [1] : vector<16x32xf32> to vector<16xf32>
    %2 = vector.shape_cast %1 : vector<16xf32> to vector<16x1xf32>
    %cst_1 = arith.constant 3.200000e+01 : f32
    %3 = vector.broadcast %cst_1 : f32 to vector<16x1xf32>
    %4 = arith.divf %2, %3 : vector<16x1xf32>
    %5 = vector.broadcast %4 : vector<16x1xf32> to vector<16x32xf32>
    %6 = arith.subf %0, %5 : vector<16x32xf32>
    %7 = arith.mulf %6, %6 : vector<16x32xf32>
    %cst_2 = arith.constant dense<0.000000e+00> : vector<16xf32>
    %8 = vector.multi_reduction <add>, %7, %cst_2 [1] : vector<16x32xf32> to vector<16xf32>
    %9 = vector.shape_cast %8 : vector<16xf32> to vector<16x1xf32>
    %cst_3 = arith.constant 3.200000e+01 : f32
    %10 = vector.broadcast %cst_3 : f32 to vector<16x1xf32>
    %11 = arith.divf %9, %10 : vector<16x1xf32>
    %cst_4 = arith.constant 9.99999996E-13 : f32
    %12 = vector.broadcast %cst_4 : f32 to vector<16x1xf32>
    %13 = arith.addf %11, %12 : vector<16x1xf32>
    %14 = math.rsqrt %13 : vector<16x1xf32>
    %15 = vector.broadcast %14 : vector<16x1xf32> to vector<16x32xf32>
    %16 = arith.mulf %6, %15 : vector<16x32xf32>
    %17 = arith.truncf %16 : vector<16x32xf32> to vector<16x32xbf16>
    %c0_5 = arith.constant 0 : index
    %c0_6 = arith.constant 0 : index
    %18 = vector.load %arg2[%c0_5, %c0_6] : memref<32x128xbf16, #tpu.memory_space<vmem>>, vector<32x128xbf16>
    %cst_7 = arith.constant dense<0.000000e+00> : vector<16x128xf32>
    %19 = tpu.matmul %17, %18, %cst_7 {dimension_numbers = #tpu.dot_dimension_numbers<[1], [0], [0], [1], [0, 0, 1, 1], [], []>} : vector<16x32xbf16>, vector<32x128xbf16>, vector<16x128xf32> -> vector<16x128xf32>
    %c0_8 = arith.constant 0 : index
    %c0_9 = arith.constant 0 : index
    %20 = vector.load %arg3[%c0_8, %c0_9] : memref<1x128xf32, #tpu.memory_space<vmem>>, vector<1x128xf32>
    %21 = vector.broadcast %20 : vector<1x128xf32> to vector<16x128xf32>
    %22 = arith.addf %19, %21 : vector<16x128xf32>
    %cst_10 = arith.constant 5.000000e-01 : f32
    %23 = vector.broadcast %cst_10 : f32 to vector<16x128xf32>
    %24 = arith.mulf %23, %22 : vector<16x128xf32>
    %cst_11 = arith.constant 4.471500e-02 : f32
    %25 = vector.broadcast %cst_11 : f32 to vector<16x128xf32>
    %26 = arith.mulf %25, %22 : vector<16x128xf32>
    %27 = arith.mulf %26, %22 : vector<16x128xf32>
    %28 = arith.mulf %27, %22 : vector<16x128xf32>
    %29 = arith.addf %22, %28 : vector<16x128xf32>
    %cst_12 = arith.constant 0.797884583 : f32
    %30 = vector.broadcast %cst_12 : f32 to vector<16x128xf32>
    %31 = arith.mulf %30, %29 : vector<16x128xf32>
    %32 = math.tanh %31 : vector<16x128xf32>
    %cst_13 = arith.constant 1.000000e+00 : f32
    %33 = vector.broadcast %cst_13 : f32 to vector<16x128xf32>
    %34 = arith.addf %33, %32 : vector<16x128xf32>
    %35 = arith.mulf %24, %34 : vector<16x128xf32>
    %36 = arith.truncf %35 : vector<16x128xf32> to vector<16x128xbf16>
    %c0_14 = arith.constant 0 : index
    %c0_15 = arith.constant 0 : index
    %37 = vector.load %arg4[%c0_14, %c0_15] : memref<128x32xbf16, #tpu.memory_space<vmem>>, vector<128x32xbf16>
    %cst_16 = arith.constant dense<0.000000e+00> : vector<16x32xf32>
    %38 = tpu.matmul %36, %37, %cst_16 {dimension_numbers = #tpu.dot_dimension_numbers<[1], [0], [0], [1], [0, 0, 1, 1], [], []>} : vector<16x128xbf16>, vector<128x32xbf16>, vector<16x32xf32> -> vector<16x32xf32>
    %c0_17 = arith.constant 0 : index
    %c0_18 = arith.constant 0 : index
    %39 = vector.load %arg5[%c0_17, %c0_18] : memref<1x32xf32, #tpu.memory_space<vmem>>, vector<1x32xf32>
    %40 = vector.broadcast %39 : vector<1x32xf32> to vector<16x32xf32>
    %41 = arith.addf %38, %40 : vector<16x32xf32>
    %42 = arith.addf %41, %0 : vector<16x32xf32>
    %c0_19 = arith.constant 0 : index
    %c0_20 = arith.constant 0 : index
    %43 = vector.load %arg6[%c0_19, %c0_20] : memref<16x32xf32, #tpu.memory_space<vmem>>, vector<16x32xf32>
    tpu.vector_store %arg6[%c0_19, %c0_20], %42 {strides = array<i32>} : memref<16x32xf32, #tpu.memory_space<vmem>>, vector<16x32xf32>,
    return
  }
  func.func @transform_0(%arg0: i32) -> (i32, i32) {
    %c0_i32 = arith.constant 0 : i32
    %c0_i32_0 = arith.constant 0 : i32
    return %arg0, %c0_i32 : i32, i32
  }
  func.func @transform_1(%arg0: i32) -> (i32, i32) {
    %c0_i32 = arith.constant 0 : i32
    %c0_i32_0 = arith.constant 0 : i32
    %c0_i32_1 = arith.constant 0 : i32
    return %c0_i32, %c0_i32_0 : i32, i32
  }
  func.func @transform_2(%arg0: i32) -> (i32, i32) {
    %c0_i32 = arith.constant 0 : i32
    %c0_i32_0 = arith.constant 0 : i32
    %c0_i32_1 = arith.constant 0 : i32
    return %c0_i32, %c0_i32_0 : i32, i32
  }
  func.func @transform_3(%arg0: i32) -> (i32, i32) {
    %c0_i32 = arith.constant 0 : i32
    %c0_i32_0 = arith.constant 0 : i32
    %c0_i32_1 = arith.constant 0 : i32
    return %c0_i32, %c0_i32_0 : i32, i32
  }
  func.func @transform_4(%arg0: i32) -> (i32, i32) {
    %c0_i32 = arith.constant 0 : i32
    %c0_i32_0 = arith.constant 0 : i32
    %c0_i32_1 = arith.constant 0 : i32
    return %c0_i32, %c0_i32_0 : i32, i32
  }
  func.func @transform_5(%arg0: i32) -> (i32, i32) {
    %c0_i32 = arith.constant 0 : i32
    %c0_i32_0 = arith.constant 0 : i32
    return %arg0, %c0_i32 : i32, i32
  }
}

</mosaic_0001>

<bundles_post_ra>
// kernel: tpu_custom_call.1
= control target key start
LH: loop header
LB: loop body
LE: loop exit
PB: predicated region body
PF: predicated region fallthrough
CT: control target
= control target key end

     0   :  { %10 = vsyncpa [#allocation3], 0  ;;  %s698_s0 = inlined_call_operand.hbm [shape: f32[16,32], index: 0, kind: input, shape index: {}]   ;;  %s699_s1 = inlined_call_operand.hbm [shape: bf16[32,128], index: 1, kind: input, shape index: {}]   ;;  %s700_s2 = inlined_call_operand.hbm [shape: f32[1,128], index: 2, kind: input, shape index: {}]   ;;  %s701_s3 = inlined_call_operand.hbm [shape: bf16[128,32], index: 3, kind: input, shape index: {}]   ;;  %s702_s4 = inlined_call_operand.hbm [shape: f32[1,32], index: 4, kind: input, shape index: {}]   ;;  %s703_s5 = inlined_call_operand.hbm [shape: f32[16,32], index: 5, kind: output, shape index: {}]  }
   0x1   :  { %11 = vsyncpa [#allocation6], 0 }
   0x2   :  { %12 = vsyncpa [#allocation9], 0 }
   0x3   :  { %13 = vsyncpa [#allocation4], 0  ;;  %s561_s18 = smov [#allocation5]   ;;  %s421_s22 = scalar_lea.hbm %s699_s1, 256 }
   0x4   :  { %s31_s19 = sshll.u32 %s561_s18, 4  ;;  %p422_p0 = scmp.ne.s32.totalorder %s699_s1, %s421_s22  ;;  %s32_s19 = int_to_ptr.vmem [resolvable:$true] %s31_s19 }
   0x5   :  { %p425_p1 = scmp.lt.u32.totalorder %s421_s22, %s699_s1 }
   0x7   :  { %p427_p2 = pnand %p425_p1, %p422_p0 }
   0x9   :  { %430 = shalt.err (!%p427_p2)
}
   0xa   :  { %s431_s27 = scalar_lea.vmem %s32_s19, 256  ;;  %p436_p4 = scmp.lt.s32.totalorder %s32_s19, %s32_s19 }
   0xb   :  { %p432_p3 = scmp.ne.s32.totalorder %s32_s19, %s431_s27  ;;  %p437_p5 = scmp.lt.s32.totalorder %s431_s27, %s431_s27 }
   0xd   :  { %p438_p6 = por %p437_p5, %p436_p4 }
   0xf   :  { %p439_p7 = pnand %p438_p6, %p432_p3 }
  0x11   :  { %442 = shalt.err (!%p439_p7)
}
  0x12   :  { %s562_s28 = smov 64   ;;  %s563_s29 = smov 4  }
  0x13   :  { %37 = dma.hbm_to_vmem [thread:$0]  %s699_s1, 256, %s32_s19, [#allocation6], %s562_s28, %s562_s28, %s563_s29  }
  0x14   :  { %s564_s7 = smov [#allocation8]   ;;  %s565_s9 = smov [#allocation2]  }
  0x15   :  { %s53_s8 = sshll.u32 %s564_s7, 4  ;;  %s19_s10 = sshll.u32 %s565_s9, 4  ;;  %s54_s8 = int_to_ptr.vmem [resolvable:$true] %s53_s8  ;;  %s20_s10 = int_to_ptr.vmem [resolvable:$true] %s19_s10 }
  0x16   :  { %s443_s13 = scalar_lea.hbm %s701_s3, 1024 }
  0x17   :  { %p444_p8 = scmp.ne.s32.totalorder %s701_s3, %s443_s13  ;;  %p447_p9 = scmp.lt.u32.totalorder %s443_s13, %s701_s3 }
  0x19   :  { %p449_p10 = pnand %p447_p9, %p444_p8 }
  0x1b   :  { %452 = shalt.err (!%p449_p10)
}
  0x1c   :  { %s453_s1 = scalar_lea.vmem %s54_s8, 1024  ;;  %p458_p12 = scmp.lt.s32.totalorder %s54_s8, %s54_s8 }
  0x1d   :  { %p454_p11 = scmp.ne.s32.totalorder %s54_s8, %s453_s1  ;;  %p459_p13 = scmp.lt.s32.totalorder %s453_s1, %s453_s1 }
  0x1f   :  { %p460_p0 = por %p459_p13, %p458_p12 }
  0x21   :  { %p461_p1 = pnand %p460_p0, %p454_p11 }
  0x23   :  { %464 = shalt.err (!%p461_p1)
}
  0x24   :  { %59 = dma.hbm_to_vmem [thread:$0]  %s701_s3, 1024, %s54_s8, [#allocation9], %s562_s28, %s562_s28, %s563_s29  }
  0x25   :  { %s465_s22 = scalar_lea.hbm %s698_s0, 256 }
  0x26   :  { %p466_p2 = scmp.ne.s32.totalorder %s698_s0, %s465_s22  ;;  %p469_p3 = scmp.lt.u32.totalorder %s465_s22, %s698_s0 }
  0x28   :  { %p471_p4 = pnand %p469_p3, %p466_p2 }
  0x2a   :  { %474 = shalt.err (!%p471_p4)
}
  0x2b   :  { %s475_s27 = scalar_lea.vmem %s20_s10, 256  ;;  %p480_p6 = scmp.lt.s32.totalorder %s20_s10, %s20_s10 }
  0x2c   :  { %p476_p5 = scmp.ne.s32.totalorder %s20_s10, %s475_s27  ;;  %p481_p7 = scmp.lt.s32.totalorder %s475_s27, %s475_s27 }
  0x2e   :  { %p482_p8 = por %p481_p7, %p480_p6 }
  0x30   :  { %p483_p9 = pnand %p482_p8, %p476_p5 }
  0x32   :  { %486 = shalt.err (!%p483_p9)
}
  0x33   :  { %s566_s3 = smov 128   ;;  %s567_s28 = smov 8  }
  0x34   :  { %25 = dma.hbm_to_vmem [thread:$0]  %s698_s0, 256, %s20_s10, [#allocation3], %s566_s3, %s566_s3, %s567_s28  }
  0x35   :  { %s568_s6 = smov [#allocation7]   ;;  %s569_s8 = smov [#allocation10]  }
  0x36   :  { %s44_s7 = sshll.u32 %s568_s6, 4  ;;  %s66_s9 = sshll.u32 %s569_s8, 4  ;;  %s45_s7 = int_to_ptr.vmem [resolvable:$true] %s44_s7  ;;  %s67_s9 = int_to_ptr.vmem [resolvable:$true] %s66_s9 }
  0x37   :  { %s487_s13 = scalar_lea.hbm %s700_s2, 16 }
  0x38   :  { %p488_p10 = scmp.ne.s32.totalorder %s700_s2, %s487_s13  ;;  %p491_p11 = scmp.lt.u32.totalorder %s487_s13, %s700_s2 }
  0x3a   :  { %p493_p12 = pnand %p491_p11, %p488_p10 }
  0x3c   :  { %496 = shalt.err (!%p493_p12)
}
  0x3d   :  { %s497_s0 = scalar_lea.vmem %s45_s7, 16  ;;  %s501_s10 = scalar_lea.vmem %s45_s7, 32 }
  0x3e   :  { %p498_p13 = scmp.ne.s32.totalorder %s45_s7, %s497_s0  ;;  %p502_p0 = scmp.lt.s32.totalorder %s45_s7, %s45_s7 }
  0x3f   :  { %p503_p1 = scmp.lt.s32.totalorder %s501_s10, %s497_s0 }
  0x41   :  { %p504_p2 = por %p503_p1, %p502_p0 }
  0x43   :  { %p505_p3 = pnand %p504_p2, %p498_p13 }
  0x45   :  { %508 = shalt.err (!%p505_p3)
}
  0x46   :  { %47 = dma.hbm_to_vmem [thread:$0]  %s700_s2, 16, %s45_s7, [#allocation6]  }
  0x47   :  { %s509_s21 = scalar_lea.hbm %s702_s4, 16 }
  0x48   :  { %p510_p4 = scmp.ne.s32.totalorder %s702_s4, %s509_s21  ;;  %p513_p5 = scmp.lt.u32.totalorder %s509_s21, %s702_s4 }
  0x4a   :  { %p515_p6 = pnand %p513_p5, %p510_p4 }
  0x4c   :  { %518 = shalt.err (!%p515_p6)
}
  0x4d   :  { %s519_s26 = scalar_lea.vmem %s67_s9, 16  ;;  %s523_s27 = scalar_lea.vmem %s67_s9, 32 }
  0x4e   :  { %p520_p7 = scmp.ne.s32.totalorder %s67_s9, %s519_s26  ;;  %p524_p8 = scmp.lt.s32.totalorder %s67_s9, %s67_s9 }
  0x4f   :  { %p525_p9 = scmp.lt.s32.totalorder %s523_s27, %s519_s26 }
  0x51   :  { %p526_p10 = por %p525_p9, %p524_p8 }
  0x53   :  { %p527_p11 = pnand %p526_p10, %p520_p7 }
  0x55   :  { %530 = shalt.err (!%p527_p11)
}
  0x56   :  { %69 = dma.hbm_to_vmem [thread:$0]  %s702_s4, 16, %s67_s9, [#allocation9]  }
  0x57   :  { %553 = dma.done.wait [#allocation3], 256  }
  0x58   :  { %554 = vsyncadd [#allocation3], 4294967040 }
  0x59   :  { %555 = dma.done.wait [#allocation6], 272  }
  0x5a   :  { %556 = vsyncadd [#allocation6], 4294967024 }
  0x5b   :  { %557 = dma.done.wait [#allocation9], 1040  }
  0x5c   :  { %558 = vsyncadd [#allocation9], 4294966256  ;;  %vm88_vm0 = vcmask 261120   ;;  %v666_v0 = vld [vmem:[#allocation2] sm:$0xff]  ;;  %v668_v1 = vld [vmem:[#allocation2 + $0x8] sm:$0xff]  ;;  %v570_v15 = vmov 0.0  }
  0x5d   :  { %v89_v2 = vsel %vm88_vm0, %v666_v0, 0.0  ;;  %v92_v3 = vsel %vm88_vm0, %v668_v1, 0.0  ;;  %v403_v14 = vld [vmem:[#allocation5] sm:$0xff]   ;;  %363 = vmatprep.subr.bf16.mxu0 %v570_v15  ;;  %vm571_vm1 = vmmov 0   ;;  %v404_v16 = vld [vmem:[#allocation5 + $0x8] sm:$0xff]   ;;  %371 = vmatprep.subr.bf16.mxu1 %v570_v15  ;;  %v405_v28 = vld [vmem:[#allocation8] sm:$0xff]  }
  0x5e   :  { %90 = vadd.xlane.f32.xlu0 %v89_v2  ;;  %367 = vmatprep.mubr.msk.bf16.mxu0 %vm571_vm1, %v570_v15  ;;  %v406_v29 = vld [vmem:[#allocation8 + $0x8] sm:$0xff]   ;;  %v407_v30 = vld [vmem:[#allocation8 + $0x10] sm:$0xff]   ;;  %v408_v31 = vld [vmem:[#allocation8 + $0x18] sm:$0xff]   ;;  %s572_s4 = smov [#allocation11]  }
  0x5f   :  { %364 = vmatpush3.bf16.msra.mxu0 %v403_v14  ;;  %387 = vmatprep.mubr.msk.bf16.mxu1 %vm571_vm1, %v570_v15  ;;  %v409_v32 = vld [vmem:[#allocation8 + $0x20] sm:$0xff]   ;;  %v410_v33 = vld [vmem:[#allocation8 + $0x28] sm:$0xff]   ;;  %v411_v34 = vld [vmem:[#allocation8 + $0x30] sm:$0xff]   ;;  %s324_s30 = sshll.u32 %s572_s4, 4  ;;  %s325_s30 = int_to_ptr.vmem [resolvable:$true] %s324_s30 }
  0x60   :  { %365 = vmatprep.subr.bf16.mxu0 %v570_v15  ;;  %372 = vmatpush3.bf16.msra.mxu1 %v405_v28  ;;  %v412_v35 = vld [vmem:[#allocation8 + $0x38] sm:$0xff]   ;;  %v342_v62 = vld [vmem:[#allocation10] ss:$0 sm:$0xff]  ;;  %s531_s6 = scalar_lea.vmem %s325_s30, 256  ;;  %p536_p13 = scmp.lt.s32.totalorder %s325_s30, %s325_s30 }
  0x61   :  { %373 = vmatprep.subr.bf16.mxu1 %v570_v15  ;;  %v338_v36 = vld [vmem:[#allocation7] ss:$0 sm:$0xff]  ;;  %p532_p12 = scmp.ne.s32.totalorder %s325_s30, %s531_s6  ;;  %p537_p0 = scmp.lt.s32.totalorder %s531_s6, %s531_s6 }
  0x62   :  { %93 = vadd.xlane.f32.xlu0 %v92_v3 }
  0x63   :  { %366 = vmatpush3.bf16.msra.mxu0 %v404_v16  ;;  %p538_p1 = por %p537_p0, %p536_p13 }
  0x64   :  { %374 = vmatpush3.bf16.msra.mxu1 %v406_v29 }
  0x65   :  { %375 = vmatprep.subr.bf16.mxu1 %v570_v15  ;;  %p539_p2 = pnand %p538_p1, %p532_p12 }
  0x68   :  { %376 = vmatpush3.bf16.msra.mxu1 %v407_v30 }
  0x69   :  { %377 = vmatprep.subr.bf16.mxu1 %v570_v15 }
  0x6c   :  { %378 = vmatpush3.bf16.msra.mxu1 %v408_v31 }
  0x6d   :  { %379 = vmatprep.subr.bf16.mxu1 %v570_v15 }
  0x70   :  { %380 = vmatpush3.bf16.msra.mxu1 %v409_v32 }
  0x71   :  { %381 = vmatprep.subr.bf16.mxu1 %v570_v15 }
  0x74   :  { %382 = vmatpush3.bf16.msra.mxu1 %v410_v33 }
  0x75   :  { %383 = vmatprep.subr.bf16.mxu1 %v570_v15 }
  0x78   :  { %384 = vmatpush3.bf16.msra.mxu1 %v411_v34 }
  0x79   :  { %385 = vmatprep.subr.bf16.mxu1 %v570_v15 }
  0x7c   :  { %386 = vmatpush3.bf16.msra.mxu1 %v412_v35 }
  0xeb   :  { %v91_v4 = vpop.xlane.xlu0 %90 }
  0xec   :  { %v96_v5 = vmul.f32 0.03125, %v91_v4 }
  0xee   :  { %v98_v6 = vsub.f32 %v666_v0, %v96_v5 }
  0xef   :  { %v94_v7 = vpop.xlane.xlu0 %93 }
  0xf0   :  { %v97_v8 = vmul.f32 0.03125, %v94_v7  ;;  %v100_v9 = vmul.f32 %v98_v6, %v98_v6 }
  0xf2   :  { %v99_v10 = vsub.f32 %v668_v1, %v97_v8  ;;  %v102_v11 = vsel %vm88_vm0, %v100_v9, 0.0 }
  0xf3   :  { %103 = vadd.xlane.f32.xlu1 %v102_v11 }
  0xf4   :  { %v101_v12 = vmul.f32 %v99_v10, %v99_v10 }
  0xf6   :  { %v105_v13 = vsel %vm88_vm0, %v101_v12, 0.0 }
  0xf7   :  { %106 = vadd.xlane.f32.xlu1 %v105_v13 }
 0x180   :  { %v104_v17 = vpop.xlane.xlu1 %103 }
 0x181   :  { %v108_v18 = vmul.f32 0.03125, %v104_v17 }
 0x183   :  { %v110_v19 = vadd.f32 1e-12, %v108_v18 }
 0x184   :  { %v107_v20 = vpop.xlane.xlu1 %106 }
 0x185   :  { %v109_v21 = vmul.f32 0.03125, %v107_v20  ;;  %413 = vrsqrt.f32 %v110_v19 }
 0x187   :  { %v111_v22 = vadd.f32 1e-12, %v109_v21 }
 0x189   :  { %415 = vrsqrt.f32 %v111_v22 }
 0x18f   :  { %v414_v23 = vpop.eup %413 }
 0x190   :  { %v114_v25 = vmul.f32 %v414_v23, %v98_v6 }
 0x193   :  { %v416_v24 = vpop.eup %415 }
 0x194   :  { %v115_v26 = vmul.f32 %v416_v24, %v99_v10 }
 0x196   :  { %v116_v27 = vpack.c.bf16 %v115_v26, %v114_v25 }
 0x198   :  { %368 = vmatmul.mubr.msk.bf16.vlgmr.msra.gmra.mrb[0].mxu0 %vm88_vm0, %v116_v27 }
 0x26b   :  { %v177_v37 = vpop.f32.mrb[0].mxu0 }
 0x26c   :  { %v178_v38 = vadd.f32 %v338_v36, %v177_v37  ;;  %v369_v39 = vpop.f32.mrb[1].mxu0 }
 0x26d   :  { %v180_v40 = vpop.f32.mrb[2].mxu0 }
 0x26e   :  { %v186_v41 = vmul.f32 0.044715, %v178_v38  ;;  %v181_v42 = vadd.f32 %v338_v36, %v180_v40  ;;  %v370_v43 = vpop.f32.mrb[3].mxu0  ;;  %v184_v56 = vmul.f32 0.5, %v178_v38 }
 0x270   :  { %v188_v44 = vmul.f32 %v186_v41, %v178_v38  ;;  %v187_v45 = vmul.f32 0.044715, %v181_v42  ;;  %v185_v57 = vmul.f32 0.5, %v181_v42 }
 0x272   :  { %v190_v46 = vmul.f32 %v188_v44, %v178_v38  ;;  %v189_v47 = vmul.f32 %v187_v45, %v181_v42 }
 0x274   :  { %v191_v48 = vmul.f32 %v189_v47, %v181_v42  ;;  %v192_v49 = vadd.f32 %v190_v46, %v178_v38 }
 0x276   :  { %v193_v50 = vadd.f32 %v191_v48, %v181_v42  ;;  %v194_v51 = vmul.f32 0.7978846, %v192_v49 }
 0x278   :  { %v195_v52 = vmul.f32 0.7978846, %v193_v50  ;;  %417 = vtanh.f32 %v194_v51 }
 0x27a   :  { %419 = vtanh.f32 %v195_v52 }
 0x282   :  { %v418_v53 = vpop.eup %417 }
 0x283   :  { %v198_v54 = vadd.f32 1.0, %v418_v53 }
 0x284   :  { %v420_v55 = vpop.eup %419 }
 0x285   :  { %v199_v58 = vadd.f32 1.0, %v420_v55  ;;  %v200_v59 = vmul.f32 %v198_v54, %v184_v56 }
 0x287   :  { %v201_v60 = vmul.f32 %v199_v58, %v185_v57 }
 0x289   :  { %v202_v61 = vpack.c.bf16 %v201_v60, %v200_v59 }
 0x28b   :  { %388 = vmatmul.mubr.bf16.vlgmr.msra.gmra.mrb[0].mxu1 %v202_v61 }
 0x35e   :  { %v308_v63 = vpop.f32.mrb[0].mxu1 }
 0x35f   :  { %v309_v2 = vadd.f32 %v342_v62, %v308_v63  ;;  %v389_v3 = vpop.f32.mrb[1].mxu1 }
 0x360   :  { %v311_v4 = vpop.f32.mrb[2].mxu1 }
 0x361   :  { %v315_v5 = vadd.f32 %v309_v2, %v666_v0  ;;  %v312_v6 = vadd.f32 %v342_v62, %v311_v4  ;;  %v390_v7 = vpop.f32.mrb[3].mxu1 }
 0x363   :  { %317 = vst.msk [vmem:[#allocation11] sm:$0xff] %vm88_vm0, %v315_v5  ;;  %v316_v8 = vadd.f32 %v312_v6, %v668_v1 }
 0x365   :  { %318 = vst.msk [vmem:[#allocation11 + $0x8] sm:$0xff] %vm88_vm0, %v316_v8 }
 0x366   :  { %542 = shalt.err (!%p539_p2)
}
 0x367   :  { %s543_s9 = scalar_lea.hbm %s703_s5, 256 }
 0x368   :  { %p544_p3 = scmp.ne.s32.totalorder %s703_s5, %s543_s9  ;;  %p547_p4 = scmp.lt.u32.totalorder %s543_s9, %s703_s5 }
 0x36a   :  { %p549_p5 = pnand %p547_p4, %p544_p3 }
 0x36c   :  { %552 = shalt.err (!%p549_p5)
}
 0x36d   :  { %330 = dma.vmem_to_hbm [thread:$0]  %s325_s30, 256, %s703_s5, [#allocation4], %s566_s3, %s566_s3, %s567_s28  }
 0x36e   :  { %559 = dma.done.wait [#allocation4], 256  }
 0x36f   :  { %560 = vsyncadd [#allocation4], 4294967040 }
 0x370   :  { %334 = vsyncpa [#allocation3], 1 }
 0x371   :  { %335 = vsyncpa [#allocation6], 1 }
 0x372   :  { %336 = vsyncpa [#allocation9], 1 }
 0x373   :  { %337 = vsyncpa [#allocation4], 1 }

</bundles_post_ra>
